<compile_context>
chip_gen: v7x
topology: tpu7x:2x2x1
jax: 0.10.0
libtpu: 0.0.40
codegen_flags: <defaults>
</compile_context>

<pallas_src>
import jax
import jax.numpy as jnp
from jax.experimental import pallas as pl
from jax.experimental.pallas import tpu as pltpu


# ---------------------------------------------------------------------------
# Kernel 1: destination-scoring MLP
#   scores[v] = choose_dest(layer2(layer1(concat([h_v, h_last]))))
# layer1 is pre-split by its two input halves wrapper-side, so the kernel never
# concatenates activations and never transposes weights.
# ---------------------------------------------------------------------------
def _choose_dest_scores_kernel(h_ref, w1a_t_ref, w1b_t_ref, b1_ref,
                               w2_t_ref, b2_ref, wd_ref, bd_ref, scores_ref):
    nd = scores_ref.shape[0]                       # num_dests (static)
    dests = h_ref[:nd, :]                          # [nd, H] candidate embeds
    src = h_ref[nd:nd + 1, :]                      # [1, H]  last-node embed
    # concat([dests, src]) @ W1^T == dests @ W1a^T + src @ W1b^T
    x1 = (jnp.dot(dests, w1a_t_ref[...], preferred_element_type=jnp.float32)
          + jnp.dot(src, w1b_t_ref[...], preferred_element_type=jnp.float32)
          + b1_ref[...])                           # [nd, 2H]
    x2 = jnp.dot(x1, w2_t_ref[...], preferred_element_type=jnp.float32) + b2_ref[...]
    # choose_dest is Linear(2H -> 1): lane-reduce instead of a width-1 matmul.
    scores_ref[...] = (jnp.sum(x2 * wd_ref[...], axis=-1, keepdims=True)
                       + bd_ref[...])              # [nd, 1]


# ---------------------------------------------------------------------------
# Kernel 2: DGMG graph propagation (T rounds, statically unrolled)
# ---------------------------------------------------------------------------
def _graph_prop_kernel(adj_ref, h0_ref, w_h_ref, msg_b_ref, wih_t_ref,
                       bih_ref, bhh_ref, hout_ref):
    A = adj_ref[...]                               # [N, N]
    deg = jnp.sum(A, axis=1, keepdims=True)        # in-degree [N, 1]
    T = w_h_ref.shape[0]                           # static round count
    H = h0_ref.shape[1]
    h = h0_ref[...]
    # T is a small compile-time constant: unroll so per-round weight reads are
    # static slices and the scheduler can interleave rounds.
    for t in range(T):
        # One fused matmul for everything that consumes the round-start h:
        #   hw = h @ [W1^T | W2^T | Whh^T]        -> [N, 7H]
        hw = jnp.dot(h, w_h_ref[t], preferred_element_type=jnp.float32)
        self_term = hw[:, :2 * H]                  # h @ W1^T
        nbr_proj = hw[:, 2 * H:4 * H]              # h @ W2^T
        gh = hw[:, 4 * H:] + bhh_ref[t]            # GRU hidden-side gates [N, 3H]
        # Reduce over in-neighbours:  (A @ h) @ W2^T == A @ (h @ W2^T)
        agg = jnp.dot(A, nbr_proj, preferred_element_type=jnp.float32)    # [N, 2H]
        a = deg * (self_term + msg_b_ref[t]) + agg                        # [N, 2H]
        # GRU input-side gates (second and last weight matmul of the round).
        gi = (jnp.dot(a, wih_t_ref[t], preferred_element_type=jnp.float32)
              + bih_ref[t])                                               # [N, 3H]
        # gi and gh must stay separate: the n-gate needs r * h_n.
        r = jax.nn.sigmoid(gi[:, :H] + gh[:, :H])
        z = jax.nn.sigmoid(gi[:, H:2 * H] + gh[:, H:2 * H])
        n = jnp.tanh(gi[:, 2 * H:] + r * gh[:, 2 * H:])
        h = (1.0 - z) * n + z * h
    hout_ref[...] = h


# ---------------------------------------------------------------------------
# Wrappers
# ---------------------------------------------------------------------------
_VMEM = pl.BlockSpec(memory_space=pltpu.MemorySpace.VMEM)


def _vmem_limit_bytes(*arrays):
    """Explicit scoped-VMEM budget sized from the resident arrays (+ headroom)."""
    data = sum(int(a.size) * a.dtype.itemsize for a in arrays)
    return int(min(64 * 1024 * 1024, max(8 * 1024 * 1024, 8 * data)))


def choose_dest_scores(h, w1a_t, w1b_t, b1, w2_t, b2, cd_w, cd_b):
    N = h.shape[0]
    args = (h, w1a_t, w1b_t, b1, w2_t, b2, cd_w, cd_b)
    return pl.pallas_call(
        _choose_dest_scores_kernel,
        out_shape=jax.ShapeDtypeStruct((N - 1, 1), jnp.float32),
        in_specs=[_VMEM] * len(args),
        out_specs=_VMEM,
        compiler_params=pltpu.CompilerParams(
            vmem_limit_bytes=_vmem_limit_bytes(*args)),
    )(*args)


def graph_prop(adj, h, w_h, msg_b, wih_t, bih, bhh):
    # TODO(synk): for large N, tile A over destination-row blocks with a
    # "parallel" grid (and bf16 A); unnecessary at these toy shapes.
    N, H = h.shape
    args = (adj, h, w_h, msg_b, wih_t, bih, bhh)
    return pl.pallas_call(
        _graph_prop_kernel,
        out_shape=jax.ShapeDtypeStruct((N, H), jnp.float32),
        in_specs=[_VMEM] * len(args),
        out_specs=_VMEM,
        compiler_params=pltpu.CompilerParams(
            vmem_limit_bytes=_vmem_limit_bytes(*args)),
    )(*args)


def prepare_params(l1_w, l1_b, l2_w, l2_b, cd_w, cd_b,
                   msg_w, msg_b, wih, whh, bih, bhh):
    """One-time wrapper-side plumbing: pre-transpose / pre-split / fuse weights
    so the kernels contain no transposes and only 2 weight matmuls per round."""
    H = whh.shape[2]
    # choose-dest MLP
    w1a_t = jnp.transpose(l1_w[:, :H])                    # [H, 2H] (dest half)
    w1b_t = jnp.transpose(l1_w[:, H:])                    # [H, 2H] (src half)
    w2_t = jnp.transpose(l2_w)                            # [2H, 2H]
    # graph propagation: fuse every matmul that consumes the round-start h.
    w1_t = jnp.transpose(msg_w[:, :, :H], (0, 2, 1))      # [T, H, 2H]
    w2m_t = jnp.transpose(msg_w[:, :, H:], (0, 2, 1))     # [T, H, 2H]
    whh_t = jnp.transpose(whh, (0, 2, 1))                 # [T, H, 3H]
    w_h = jnp.concatenate([w1_t, w2m_t, whh_t], axis=2)   # [T, H, 7H]
    wih_t = jnp.transpose(wih, (0, 2, 1))                 # [T, 2H, 3H]
    return (w1a_t, w1b_t, l1_b, w2_t, l2_b, cd_w, cd_b,
            w_h, msg_b, wih_t, bih, bhh)


@jax.jit
def _forward_impl(adj, h, params):
    (w1a_t, w1b_t, b1, w2_t, b2, cd_w, cd_b,
     w_h, msg_b, wih_t, bih, bhh) = params
    N = h.shape[0]
    last = N - 1
    scores = choose_dest_scores(h, w1a_t, w1b_t, b1, w2_t, b2, cd_w, cd_b)
    scores = scores.reshape(-1)                    # [num_dests]
    probs = jax.nn.softmax(scores)
    dest = jnp.argmax(scores)                      # eval mode: greedy argmax
    has_edge = adj[dest, last] > 0.5               # edge last -> dest exists?
    new_adj = adj.at[dest, last].set(1.0)          # add edge (he = 1 implicit)
    h_prop = graph_prop(new_adj, h, w_h, msg_b, wih_t, bih, bhh)
    new_h = jnp.where(has_edge, h, h_prop)         # propagate only for a new edge
    return dest, probs, new_adj, new_h


def choose_dest_and_update(adj, h, params):
    """Eval-mode ChooseDestAndUpdate.forward. Returns (dest, probs, adj, h)."""
    if h.shape[0] - 1 == 0:                        # num_dests == 0 -> no-op
        return None
    return _forward_impl(adj, h, params)


# ---------------------------------------------------------------------------
# Pure-JAX reference mirroring the PyTorch module (eval mode)
# ---------------------------------------------------------------------------
def reference_forward(adj, h, l1_w, l1_b, l2_w, l2_b, cd_w, cd_b,
                      msg_w, msg_b, wih, whh, bih, bhh):
    N, H = h.shape
    nd = N - 1
    vec = jnp.concatenate(
        [h[:nd], jnp.broadcast_to(h[nd:nd + 1], (nd, H))], axis=1)
    x = vec @ l1_w.T + l1_b
    x = x @ l2_w.T + l2_b
    scores = (x @ cd_w.T + cd_b).reshape(-1)
    probs = jax.nn.softmax(scores)
    dest = int(jnp.argmax(scores))
    has_edge = bool(adj[dest, nd] > 0.5)
    new_adj = adj.at[dest, nd].set(1.0)

    def prop(A, hh):
        deg = A.sum(axis=1, keepdims=True)
        for t in range(msg_w.shape[0]):
            Wm, bm = msg_w[t], msg_b[t]
            agg = A @ hh
            a = deg * (hh @ Wm[:, :H].T + bm) + agg @ Wm[:, H:].T
            gi = a @ wih[t].T + bih[t]
            gh = hh @ whh[t].T + bhh[t]
            r = jax.nn.sigmoid(gi[:, :H] + gh[:, :H])
            z = jax.nn.sigmoid(gi[:, H:2 * H] + gh[:, H:2 * H])
            n = jnp.tanh(gi[:, 2 * H:] + r * gh[:, 2 * H:])
            hh = (1.0 - z) * n + z * hh
        return hh

    new_h = h if has_edge else prop(new_adj, h)
    return dest, probs, new_adj, new_h


if __name__ == "__main__":
    num_prop_rounds = 2
    H = 32                                   # node_hidden_size
    N = 8                                    # nodes; last node (id 7) just added

    key = jax.random.PRNGKey(0)
    keys = jax.random.split(key, 14)
    scale = 0.1

    # Dense directed adjacency (dst x src). The freshly added last node has no
    # outgoing edges yet -- exactly the state in which ChooseDestAndUpdate runs.
    adj = (jax.random.uniform(keys[0], (N, N)) < 0.4).astype(jnp.float32)
    adj = adj * (1.0 - jnp.eye(N, dtype=jnp.float32))     # no self loops
    adj = adj.at[:, N - 1].set(0.0)                       # last node: no out-edges

    h0 = jax.random.normal(keys[1], (N, H), dtype=jnp.float32)

    # ChooseDestAndUpdate's own linear layers.
    l1_w = scale * jax.random.normal(keys[2], (2 * H, 2 * H), jnp.float32)
    l1_b = scale * jax.random.normal(keys[3], (1, 2 * H), jnp.float32)
    l2_w = scale * jax.random.normal(keys[4], (2 * H, 2 * H), jnp.float32)
    l2_b = scale * jax.random.normal(keys[5], (1, 2 * H), jnp.float32)
    cd_w = scale * jax.random.normal(keys[6], (1, 2 * H), jnp.float32)
    cd_b = scale * jax.random.normal(keys[7], (1, 1), jnp.float32)

    # GraphProp (graph_prop_func) per-round parameters.
    msg_w = scale * jax.random.normal(keys[8], (num_prop_rounds, 2 * H, 2 * H), jnp.float32)
    msg_b = scale * jax.random.normal(keys[9], (num_prop_rounds, 1, 2 * H), jnp.float32)
    wih = scale * jax.random.normal(keys[10], (num_prop_rounds, 3 * H, 2 * H), jnp.float32)
    whh = scale * jax.random.normal(keys[11], (num_prop_rounds, 3 * H, H), jnp.float32)
    bih = scale * jax.random.normal(keys[12], (num_prop_rounds, 1, 3 * H), jnp.float32)
    bhh = scale * jax.random.normal(keys[13], (num_prop_rounds, 1, 3 * H), jnp.float32)

    params = prepare_params(l1_w, l1_b, l2_w, l2_b, cd_w, cd_b,
                            msg_w, msg_b, wih, whh, bih, bhh)

    dest, probs, new_adj, new_h = choose_dest_and_update(adj, h0, params)
    jax.block_until_ready((dest, probs, new_adj, new_h))

    ref_dest, ref_probs, ref_adj, ref_h = reference_forward(
        adj, h0, l1_w, l1_b, l2_w, l2_b, cd_w, cd_b,
        msg_w, msg_b, wih, whh, bih, bhh)

    assert int(dest) == ref_dest, f"dest mismatch: {int(dest)} vs {ref_dest}"
    assert jnp.allclose(probs, ref_probs, atol=1e-4, rtol=1e-4), "probs mismatch"
    assert jnp.allclose(new_adj, ref_adj), "adjacency mismatch"
    assert jnp.allclose(new_h, ref_h, atol=1e-4, rtol=1e-4), "hidden-state mismatch"

    print("KERNEL_OK")
</pallas_src>

<mosaic_0001>
module attributes {stable_mosaic.version = 11 : i64} {
  func.func @_choose_dest_scores_kernel(%arg0: memref<8x32xf32, #tpu.memory_space<vmem>>, %arg1: memref<32x64xf32, #tpu.memory_space<vmem>>, %arg2: memref<32x64xf32, #tpu.memory_space<vmem>>, %arg3: memref<1x64xf32, #tpu.memory_space<vmem>>, %arg4: memref<64x64xf32, #tpu.memory_space<vmem>>, %arg5: memref<1x64xf32, #tpu.memory_space<vmem>>, %arg6: memref<1x64xf32, #tpu.memory_space<vmem>>, %arg7: memref<1x1xf32, #tpu.memory_space<vmem>>, %arg8: memref<7x1xf32, #tpu.memory_space<vmem>>) attributes {dimension_semantics = [], scalar_prefetch = 0 : i64, scratch_operands = 0 : i64, tpu.core_type = #tpu.core_type<tc>} {
    %c0 = arith.constant 0 : index
    %c0_0 = arith.constant 0 : index
    %0 = vector.load %arg0[%c0, %c0_0] : memref<8x32xf32, #tpu.memory_space<vmem>>, vector<7x32xf32>
    %c7 = arith.constant 7 : index
    %c0_1 = arith.constant 0 : index
    %1 = vector.load %arg0[%c7, %c0_1] : memref<8x32xf32, #tpu.memory_space<vmem>>, vector<1x32xf32>
    %c0_2 = arith.constant 0 : index
    %c0_3 = arith.constant 0 : index
    %2 = vector.load %arg1[%c0_2, %c0_3] : memref<32x64xf32, #tpu.memory_space<vmem>>, vector<32x64xf32>
    %cst = arith.constant dense<0.000000e+00> : vector<7x64xf32>
    %3 = tpu.matmul %0, %2, %cst {dimension_numbers = #tpu.dot_dimension_numbers<[1], [0], [0], [1], [0, 0, 1, 1], [], []>} : vector<7x32xf32>, vector<32x64xf32>, vector<7x64xf32> -> vector<7x64xf32>
    %c0_4 = arith.constant 0 : index
    %c0_5 = arith.constant 0 : index
    %4 = vector.load %arg2[%c0_4, %c0_5] : memref<32x64xf32, #tpu.memory_space<vmem>>, vector<32x64xf32>
    %cst_6 = arith.constant dense<0.000000e+00> : vector<1x64xf32>
    %5 = tpu.matmul %1, %4, %cst_6 {dimension_numbers = #tpu.dot_dimension_numbers<[1], [0], [0], [1], [0, 0, 1, 1], [], []>} : vector<1x32xf32>, vector<32x64xf32>, vector<1x64xf32> -> vector<1x64xf32>
    %6 = vector.broadcast %5 : vector<1x64xf32> to vector<7x64xf32>
    %7 = arith.addf %3, %6 : vector<7x64xf32>
    %c0_7 = arith.constant 0 : index
    %c0_8 = arith.constant 0 : index
    %8 = vector.load %arg3[%c0_7, %c0_8] : memref<1x64xf32, #tpu.memory_space<vmem>>, vector<1x64xf32>
    %9 = vector.broadcast %8 : vector<1x64xf32> to vector<7x64xf32>
    %10 = arith.addf %7, %9 : vector<7x64xf32>
    %c0_9 = arith.constant 0 : index
    %c0_10 = arith.constant 0 : index
    %11 = vector.load %arg4[%c0_9, %c0_10] : memref<64x64xf32, #tpu.memory_space<vmem>>, vector<64x64xf32>
    %cst_11 = arith.constant dense<0.000000e+00> : vector<7x64xf32>
    %12 = tpu.matmul %10, %11, %cst_11 {dimension_numbers = #tpu.dot_dimension_numbers<[1], [0], [0], [1], [0, 0, 1, 1], [], []>} : vector<7x64xf32>, vector<64x64xf32>, vector<7x64xf32> -> vector<7x64xf32>
    %c0_12 = arith.constant 0 : index
    %c0_13 = arith.constant 0 : index
    %13 = vector.load %arg5[%c0_12, %c0_13] : memref<1x64xf32, #tpu.memory_space<vmem>>, vector<1x64xf32>
    %14 = vector.broadcast %13 : vector<1x64xf32> to vector<7x64xf32>
    %15 = arith.addf %12, %14 : vector<7x64xf32>
    %c0_14 = arith.constant 0 : index
    %c0_15 = arith.constant 0 : index
    %16 = vector.load %arg6[%c0_14, %c0_15] : memref<1x64xf32, #tpu.memory_space<vmem>>, vector<1x64xf32>
    %17 = vector.broadcast %16 : vector<1x64xf32> to vector<7x64xf32>
    %18 = arith.mulf %15, %17 : vector<7x64xf32>
    %cst_16 = arith.constant dense<0.000000e+00> : vector<7xf32>
    %19 = vector.multi_reduction <add>, %18, %cst_16 [1] : vector<7x64xf32> to vector<7xf32>
    %20 = vector.shape_cast %19 : vector<7xf32> to vector<7x1xf32>
    %c0_17 = arith.constant 0 : index
    %c0_18 = arith.constant 0 : index
    %21 = vector.load %arg7[%c0_17, %c0_18] : memref<1x1xf32, #tpu.memory_space<vmem>>, vector<1x1xf32>
    %22 = vector.broadcast %21 : vector<1x1xf32> to vector<7x1xf32>
    %23 = arith.addf %20, %22 : vector<7x1xf32>
    %c0_19 = arith.constant 0 : index
    %c0_20 = arith.constant 0 : index
    %24 = vector.load %arg8[%c0_19, %c0_20] : memref<7x1xf32, #tpu.memory_space<vmem>>, vector<7x1xf32>
    tpu.vector_store %arg8[%c0_19, %c0_20], %23 {strides = array<i32>} : memref<7x1xf32, #tpu.memory_space<vmem>>, vector<7x1xf32>,
    return
  }
}

module attributes {stable_mosaic.version = 11 : i64} {
  func.func @_graph_prop_kernel(%arg0: memref<8x8xf32, #tpu.memory_space<vmem>>, %arg1: memref<8x32xf32, #tpu.memory_space<vmem>>, %arg2: memref<2x32x224xf32, #tpu.memory_space<vmem>>, %arg3: memref<2x1x64xf32, #tpu.memory_space<vmem>>, %arg4: memref<2x64x96xf32, #tpu.memory_space<vmem>>, %arg5: memref<2x1x96xf32, #tpu.memory_space<vmem>>, %arg6: memref<2x1x96xf32, #tpu.memory_space<vmem>>, %arg7: memref<8x32xf32, #tpu.memory_space<vmem>>) attributes {dimension_semantics = [], scalar_prefetch = 0 : i64, scratch_operands = 0 : i64, tpu.core_type = #tpu.core_type<tc>} {
    %c0 = arith.constant 0 : index
    %c0_0 = arith.constant 0 : index
    %0 = vector.load %arg0[%c0, %c0_0] : memref<8x8xf32, #tpu.memory_space<vmem>>, vector<8x8xf32>
    %cst = arith.constant dense<0.000000e+00> : vector<8xf32>
    %1 = vector.multi_reduction <add>, %0, %cst [1] : vector<8x8xf32> to vector<8xf32>
    %2 = vector.shape_cast %1 : vector<8xf32> to vector<8x1xf32>
    %c0_1 = arith.constant 0 : index
    %c0_2 = arith.constant 0 : index
    %3 = vector.load %arg1[%c0_1, %c0_2] : memref<8x32xf32, #tpu.memory_space<vmem>>, vector<8x32xf32>
    %c0_3 = arith.constant 0 : index
    %c0_4 = arith.constant 0 : index
    %c0_5 = arith.constant 0 : index
    %4 = vector.load %arg2[%c0_3, %c0_4, %c0_5] : memref<2x32x224xf32, #tpu.memory_space<vmem>>, vector<1x32x224xf32>
    %5 = vector.shape_cast %4 : vector<1x32x224xf32> to vector<32x224xf32>
    %cst_6 = arith.constant dense<0.000000e+00> : vector<8x224xf32>
    %6 = tpu.matmul %3, %5, %cst_6 {dimension_numbers = #tpu.dot_dimension_numbers<[1], [0], [0], [1], [0, 0, 1, 1], [], []>} : vector<8x32xf32>, vector<32x224xf32>, vector<8x224xf32> -> vector<8x224xf32>
    %7 = vector.extract_strided_slice %6 {offsets = [0, 0], sizes = [8, 64], strides = [1, 1]} : vector<8x224xf32> to vector<8x64xf32>
    %8 = vector.extract_strided_slice %6 {offsets = [0, 64], sizes = [8, 64], strides = [1, 1]} : vector<8x224xf32> to vector<8x64xf32>
    %9 = vector.extract_strided_slice %6 {offsets = [0, 128], sizes = [8, 96], strides = [1, 1]} : vector<8x224xf32> to vector<8x96xf32>
    %c0_7 = arith.constant 0 : index
    %c0_8 = arith.constant 0 : index
    %c0_9 = arith.constant 0 : index
    %10 = vector.load %arg6[%c0_7, %c0_8, %c0_9] : memref<2x1x96xf32, #tpu.memory_space<vmem>>, vector<1x1x96xf32>
    %11 = vector.shape_cast %10 : vector<1x1x96xf32> to vector<1x96xf32>
    %12 = vector.broadcast %11 : vector<1x96xf32> to vector<8x96xf32>
    %13 = arith.addf %9, %12 : vector<8x96xf32>
    %cst_10 = arith.constant dense<0.000000e+00> : vector<8x64xf32>
    %14 = tpu.matmul %0, %8, %cst_10 {dimension_numbers = #tpu.dot_dimension_numbers<[1], [0], [0], [1], [0, 0, 1, 1], [], []>} : vector<8x8xf32>, vector<8x64xf32>, vector<8x64xf32> -> vector<8x64xf32>
    %c0_11 = arith.constant 0 : index
    %c0_12 = arith.constant 0 : index
    %c0_13 = arith.constant 0 : index
    %15 = vector.load %arg3[%c0_11, %c0_12, %c0_13] : memref<2x1x64xf32, #tpu.memory_space<vmem>>, vector<1x1x64xf32>
    %16 = vector.shape_cast %15 : vector<1x1x64xf32> to vector<1x64xf32>
    %17 = vector.broadcast %16 : vector<1x64xf32> to vector<8x64xf32>
    %18 = arith.addf %7, %17 : vector<8x64xf32>
    %19 = vector.broadcast %2 : vector<8x1xf32> to vector<8x64xf32>
    %20 = arith.mulf %19, %18 : vector<8x64xf32>
    %21 = arith.addf %20, %14 : vector<8x64xf32>
    %c0_14 = arith.constant 0 : index
    %c0_15 = arith.constant 0 : index
    %c0_16 = arith.constant 0 : index
    %22 = vector.load %arg4[%c0_14, %c0_15, %c0_16] : memref<2x64x96xf32, #tpu.memory_space<vmem>>, vector<1x64x96xf32>
    %23 = vector.shape_cast %22 : vector<1x64x96xf32> to vector<64x96xf32>
    %cst_17 = arith.constant dense<0.000000e+00> : vector<8x96xf32>
    %24 = tpu.matmul %21, %23, %cst_17 {dimension_numbers = #tpu.dot_dimension_numbers<[1], [0], [0], [1], [0, 0, 1, 1], [], []>} : vector<8x64xf32>, vector<64x96xf32>, vector<8x96xf32> -> vector<8x96xf32>
    %c0_18 = arith.constant 0 : index
    %c0_19 = arith.constant 0 : index
    %c0_20 = arith.constant 0 : index
    %25 = vector.load %arg5[%c0_18, %c0_19, %c0_20] : memref<2x1x96xf32, #tpu.memory_space<vmem>>, vector<1x1x96xf32>
    %26 = vector.shape_cast %25 : vector<1x1x96xf32> to vector<1x96xf32>
    %27 = vector.broadcast %26 : vector<1x96xf32> to vector<8x96xf32>
    %28 = arith.addf %24, %27 : vector<8x96xf32>
    %29 = vector.extract_strided_slice %28 {offsets = [0, 0], sizes = [8, 32], strides = [1, 1]} : vector<8x96xf32> to vector<8x32xf32>
    %30 = vector.extract_strided_slice %13 {offsets = [0, 0], sizes = [8, 32], strides = [1, 1]} : vector<8x96xf32> to vector<8x32xf32>
    %31 = arith.addf %29, %30 : vector<8x32xf32>
    %32 = arith.negf %31 : vector<8x32xf32>
    %33 = math.exp %32 : vector<8x32xf32>
    %cst_21 = arith.constant 1.000000e+00 : f32
    %34 = vector.broadcast %cst_21 : f32 to vector<8x32xf32>
    %35 = arith.addf %34, %33 : vector<8x32xf32>
    %36 = arith.divf %34, %35 : vector<8x32xf32>
    %37 = vector.extract_strided_slice %28 {offsets = [0, 32], sizes = [8, 32], strides = [1, 1]} : vector<8x96xf32> to vector<8x32xf32>
    %38 = vector.extract_strided_slice %13 {offsets = [0, 32], sizes = [8, 32], strides = [1, 1]} : vector<8x96xf32> to vector<8x32xf32>
    %39 = arith.addf %37, %38 : vector<8x32xf32>
    %40 = arith.negf %39 : vector<8x32xf32>
    %41 = math.exp %40 : vector<8x32xf32>
    %cst_22 = arith.constant 1.000000e+00 : f32
    %42 = vector.broadcast %cst_22 : f32 to vector<8x32xf32>
    %43 = arith.addf %42, %41 : vector<8x32xf32>
    %44 = arith.divf %42, %43 : vector<8x32xf32>
    %45 = vector.extract_strided_slice %28 {offsets = [0, 64], sizes = [8, 32], strides = [1, 1]} : vector<8x96xf32> to vector<8x32xf32>
    %46 = vector.extract_strided_slice %13 {offsets = [0, 64], sizes = [8, 32], strides = [1, 1]} : vector<8x96xf32> to vector<8x32xf32>
    %47 = arith.mulf %36, %46 : vector<8x32xf32>
    %48 = arith.addf %45, %47 : vector<8x32xf32>
    %49 = math.tanh %48 : vector<8x32xf32>
    %cst_23 = arith.constant 1.000000e+00 : f32
    %50 = vector.broadcast %cst_23 : f32 to vector<8x32xf32>
    %51 = arith.subf %50, %44 : vector<8x32xf32>
    %52 = arith.mulf %51, %49 : vector<8x32xf32>
    %53 = arith.mulf %44, %3 : vector<8x32xf32>
    %54 = arith.addf %52, %53 : vector<8x32xf32>
    %c1 = arith.constant 1 : index
    %c0_24 = arith.constant 0 : index
    %c0_25 = arith.constant 0 : index
    %55 = vector.load %arg2[%c1, %c0_24, %c0_25] : memref<2x32x224xf32, #tpu.memory_space<vmem>>, vector<1x32x224xf32>
    %56 = vector.shape_cast %55 : vector<1x32x224xf32> to vector<32x224xf32>
    %cst_26 = arith.constant dense<0.000000e+00> : vector<8x224xf32>
    %57 = tpu.matmul %54, %56, %cst_26 {dimension_numbers = #tpu.dot_dimension_numbers<[1], [0], [0], [1], [0, 0, 1, 1], [], []>} : vector<8x32xf32>, vector<32x224xf32>, vector<8x224xf32> -> vector<8x224xf32>
    %58 = vector.extract_strided_slice %57 {offsets = [0, 0], sizes = [8, 64], strides = [1, 1]} : vector<8x224xf32> to vector<8x64xf32>
    %59 = vector.extract_strided_slice %57 {offsets = [0, 64], sizes = [8, 64], strides = [1, 1]} : vector<8x224xf32> to vector<8x64xf32>
    %60 = vector.extract_strided_slice %57 {offsets = [0, 128], sizes = [8, 96], strides = [1, 1]} : vector<8x224xf32> to vector<8x96xf32>
    %c1_27 = arith.constant 1 : index
    %c0_28 = arith.constant 0 : index
    %c0_29 = arith.constant 0 : index
    %61 = vector.load %arg6[%c1_27, %c0_28, %c0_29] : memref<2x1x96xf32, #tpu.memory_space<vmem>>, vector<1x1x96xf32>
    %62 = vector.shape_cast %61 : vector<1x1x96xf32> to vector<1x96xf32>
    %63 = vector.broadcast %62 : vector<1x96xf32> to vector<8x96xf32>
    %64 = arith.addf %60, %63 : vector<8x96xf32>
    %cst_30 = arith.constant dense<0.000000e+00> : vector<8x64xf32>
    %65 = tpu.matmul %0, %59, %cst_30 {dimension_numbers = #tpu.dot_dimension_numbers<[1], [0], [0], [1], [0, 0, 1, 1], [], []>} : vector<8x8xf32>, vector<8x64xf32>, vector<8x64xf32> -> vector<8x64xf32>
    %c1_31 = arith.constant 1 : index
    %c0_32 = arith.constant 0 : index
    %c0_33 = arith.constant 0 : index
    %66 = vector.load %arg3[%c1_31, %c0_32, %c0_33] : memref<2x1x64xf32, #tpu.memory_space<vmem>>, vector<1x1x64xf32>
    %67 = vector.shape_cast %66 : vector<1x1x64xf32> to vector<1x64xf32>
    %68 = vector.broadcast %67 : vector<1x64xf32> to vector<8x64xf32>
    %69 = arith.addf %58, %68 : vector<8x64xf32>
    %70 = vector.broadcast %2 : vector<8x1xf32> to vector<8x64xf32>
    %71 = arith.mulf %70, %69 : vector<8x64xf32>
    %72 = arith.addf %71, %65 : vector<8x64xf32>
    %c1_34 = arith.constant 1 : index
    %c0_35 = arith.constant 0 : index
    %c0_36 = arith.constant 0 : index
    %73 = vector.load %arg4[%c1_34, %c0_35, %c0_36] : memref<2x64x96xf32, #tpu.memory_space<vmem>>, vector<1x64x96xf32>
    %74 = vector.shape_cast %73 : vector<1x64x96xf32> to vector<64x96xf32>
    %cst_37 = arith.constant dense<0.000000e+00> : vector<8x96xf32>
    %75 = tpu.matmul %72, %74, %cst_37 {dimension_numbers = #tpu.dot_dimension_numbers<[1], [0], [0], [1], [0, 0, 1, 1], [], []>} : vector<8x64xf32>, vector<64x96xf32>, vector<8x96xf32> -> vector<8x96xf32>
    %c1_38 = arith.constant 1 : index
    %c0_39 = arith.constant 0 : index
    %c0_40 = arith.constant 0 : index
    %76 = vector.load %arg5[%c1_38, %c0_39, %c0_40] : memref<2x1x96xf32, #tpu.memory_space<vmem>>, vector<1x1x96xf32>
    %77 = vector.shape_cast %76 : vector<1x1x96xf32> to vector<1x96xf32>
    %78 = vector.broadcast %77 : vector<1x96xf32> to vector<8x96xf32>
    %79 = arith.addf %75, %78 : vector<8x96xf32>
    %80 = vector.extract_strided_slice %79 {offsets = [0, 0], sizes = [8, 32], strides = [1, 1]} : vector<8x96xf32> to vector<8x32xf32>
    %81 = vector.extract_strided_slice %64 {offsets = [0, 0], sizes = [8, 32], strides = [1, 1]} : vector<8x96xf32> to vector<8x32xf32>
    %82 = arith.addf %80, %81 : vector<8x32xf32>
    %83 = arith.negf %82 : vector<8x32xf32>
    %84 = math.exp %83 : vector<8x32xf32>
    %cst_41 = arith.constant 1.000000e+00 : f32
    %85 = vector.broadcast %cst_41 : f32 to vector<8x32xf32>
    %86 = arith.addf %85, %84 : vector<8x32xf32>
    %87 = arith.divf %85, %86 : vector<8x32xf32>
    %88 = vector.extract_strided_slice %79 {offsets = [0, 32], sizes = [8, 32], strides = [1, 1]} : vector<8x96xf32> to vector<8x32xf32>
    %89 = vector.extract_strided_slice %64 {offsets = [0, 32], sizes = [8, 32], strides = [1, 1]} : vector<8x96xf32> to vector<8x32xf32>
    %90 = arith.addf %88, %89 : vector<8x32xf32>
    %91 = arith.negf %90 : vector<8x32xf32>
    %92 = math.exp %91 : vector<8x32xf32>
    %cst_42 = arith.constant 1.000000e+00 : f32
    %93 = vector.broadcast %cst_42 : f32 to vector<8x32xf32>
    %94 = arith.addf %93, %92 : vector<8x32xf32>
    %95 = arith.divf %93, %94 : vector<8x32xf32>
    %96 = vector.extract_strided_slice %79 {offsets = [0, 64], sizes = [8, 32], strides = [1, 1]} : vector<8x96xf32> to vector<8x32xf32>
    %97 = vector.extract_strided_slice %64 {offsets = [0, 64], sizes = [8, 32], strides = [1, 1]} : vector<8x96xf32> to vector<8x32xf32>
    %98 = arith.mulf %87, %97 : vector<8x32xf32>
    %99 = arith.addf %96, %98 : vector<8x32xf32>
    %100 = math.tanh %99 : vector<8x32xf32>
    %cst_43 = arith.constant 1.000000e+00 : f32
    %101 = vector.broadcast %cst_43 : f32 to vector<8x32xf32>
    %102 = arith.subf %101, %95 : vector<8x32xf32>
    %103 = arith.mulf %102, %100 : vector<8x32xf32>
    %104 = arith.mulf %95, %54 : vector<8x32xf32>
    %105 = arith.addf %103, %104 : vector<8x32xf32>
    %c0_44 = arith.constant 0 : index
    %c0_45 = arith.constant 0 : index
    %106 = vector.load %arg7[%c0_44, %c0_45] : memref<8x32xf32, #tpu.memory_space<vmem>>, vector<8x32xf32>
    tpu.vector_store %arg7[%c0_44, %c0_45], %105 {strides = array<i32>} : memref<8x32xf32, #tpu.memory_space<vmem>>, vector<8x32xf32>,
    return
  }
}

</mosaic_0001>

<bundles_post_ra>
// kernel: _forward_impl.2
= control target key start
LH: loop header
LB: loop body
LE: loop exit
PB: predicated region body
PF: predicated region fallthrough
CT: control target
= control target key end

     0   :  { %s796_s0 = inlined_call_operand.vmem [shape: f32[8,32], index: 0, kind: input, shape index: {}]   ;;  %s797_s1 = inlined_call_operand.hbm [shape: f32[32,64], index: 1, kind: input, shape index: {}]   ;;  %s798_s2 = inlined_call_operand.hbm [shape: f32[32,64], index: 2, kind: input, shape index: {}]   ;;  %s799_s3 = inlined_call_operand.hbm [shape: f32[1,64], index: 3, kind: input, shape index: {}]   ;;  %s800_s4 = inlined_call_operand.hbm [shape: f32[64,64], index: 4, kind: input, shape index: {}]   ;;  %s801_s5 = inlined_call_operand.hbm [shape: f32[1,64], index: 5, kind: input, shape index: {}]   ;;  %s802_s6 = inlined_call_operand.hbm [shape: f32[1,64], index: 6, kind: input, shape index: {}]   ;;  %s803_s7 = inlined_call_operand.<no memory space> [shape: f32[1,1], index: 7, kind: input, shape index: {}]   ;;  %s804_s8 = inlined_call_operand.vmem [shape: f32[7,1], index: 8, kind: output, shape index: {}]  }
   0x1   :  { %v13_v0 = vstv %s803_s7 }
   0x2   :  { %14 = vst [vmem:[#allocation2] sm:$0x1] %v13_v0 }
   0x3   :  { %15 = vsyncpa [#allocation4], 0 }
   0x4   :  { %16 = vsyncpa [#allocation6], 0 }
   0x5   :  { %17 = vsyncpa [#allocation9], 0 }
   0x6   :  { %18 = vsyncpa [#allocation12], 0  ;;  %s637_s29 = smov [#allocation5]   ;;  %s638_s9 = smov [#allocation8]  }
   0x7   :  { %s38_s30 = sshll.u32 %s637_s29, 4  ;;  %s60_s10 = sshll.u32 %s638_s9, 4  ;;  %s39_s30 = int_to_ptr.vmem [resolvable:$true] %s38_s30  ;;  %s696_s10 = int_to_ptr.vmem [resolvable:$true] %s60_s10 }
   0x8   :  { %s497_s13 = scalar_lea.hbm %s798_s2, 512 }
   0x9   :  { %p498_p0 = scmp.ne.s32.totalorder %s798_s2, %s497_s13  ;;  %p501_p1 = scmp.lt.u32.totalorder %s497_s13, %s798_s2 }
   0xb   :  { %p503_p2 = pnand %p501_p1, %p498_p0 }
   0xd   :  { %506 = shalt.err (!%p503_p2)
}
   0xe   :  { %s507_s17 = scalar_lea.vmem %s39_s30, 512  ;;  %p512_p4 = scmp.lt.s32.totalorder %s39_s30, %s39_s30 }
   0xf   :  { %p508_p3 = scmp.ne.s32.totalorder %s39_s30, %s507_s17  ;;  %p513_p5 = scmp.lt.s32.totalorder %s507_s17, %s507_s17 }
  0x11   :  { %p514_p6 = por %p513_p5, %p512_p4 }
  0x13   :  { %p515_p7 = pnand %p514_p6, %p508_p3 }
  0x15   :  { %518 = shalt.err (!%p515_p7)
}
  0x16   :  { %s639_s18 = smov 128   ;;  %s640_s19 = smov 8  }
  0x17   :  { %44 = dma.hbm_to_vmem [thread:$0]  %s798_s2, 512, %s39_s30, [#allocation6], %s639_s18, %s639_s18, %s640_s19  }
  0x18   :  { %s519_s24 = scalar_lea.hbm %s800_s4, 1024 }
  0x19   :  { %p520_p8 = scmp.ne.s32.totalorder %s800_s4, %s519_s24  ;;  %p523_p9 = scmp.lt.u32.totalorder %s519_s24, %s800_s4 }
  0x1b   :  { %p525_p10 = pnand %p523_p9, %p520_p8 }
  0x1d   :  { %528 = shalt.err (!%p525_p10)
}
  0x1e   :  { %s529_s29 = scalar_lea.vmem %s696_s10, 1024  ;;  %p534_p12 = scmp.lt.s32.totalorder %s696_s10, %s696_s10 }
  0x1f   :  { %p530_p11 = scmp.ne.s32.totalorder %s696_s10, %s529_s29  ;;  %p535_p13 = scmp.lt.s32.totalorder %s529_s29, %s529_s29 }
  0x21   :  { %p536_p0 = por %p535_p13, %p534_p12 }
  0x23   :  { %p537_p1 = pnand %p536_p0, %p530_p11 }
  0x25   :  { %540 = shalt.err (!%p537_p1)
}
  0x26   :  { %66 = dma.hbm_to_vmem [thread:$0]  %s800_s4, 1024, %s696_s10, [#allocation9], %s639_s18, %s639_s18, %s640_s19  }
  0x27   :  { %s641_s9 = smov [#allocation3]   ;;  %s642_s12 = smov [#allocation7]  }
  0x28   :  { %s26_s11 = sshll.u32 %s641_s9, 4  ;;  %s51_s13 = sshll.u32 %s642_s12, 4  ;;  %s27_s11 = int_to_ptr.vmem [resolvable:$true] %s26_s11  ;;  %s52_s13 = int_to_ptr.vmem [resolvable:$true] %s51_s13 }
  0x29   :  { %s541_s7 = scalar_lea.hbm %s797_s1, 512 }
  0x2a   :  { %p542_p2 = scmp.ne.s32.totalorder %s797_s1, %s541_s7  ;;  %p545_p3 = scmp.lt.u32.totalorder %s541_s7, %s797_s1 }
  0x2c   :  { %p547_p4 = pnand %p545_p3, %p542_p2 }
  0x2e   :  { %550 = shalt.err (!%p547_p4)
}
  0x2f   :  { %s551_s4 = scalar_lea.vmem %s27_s11, 512  ;;  %p556_p6 = scmp.lt.s32.totalorder %s27_s11, %s27_s11 }
  0x30   :  { %p552_p5 = scmp.ne.s32.totalorder %s27_s11, %s551_s4  ;;  %p557_p7 = scmp.lt.s32.totalorder %s551_s4, %s551_s4 }
  0x32   :  { %p558_p8 = por %p557_p7, %p556_p6 }
  0x34   :  { %p559_p9 = pnand %p558_p8, %p552_p5 }
  0x36   :  { %562 = shalt.err (!%p559_p9)
}
  0x37   :  { %32 = dma.hbm_to_vmem [thread:$0]  %s797_s1, 512, %s27_s11, [#allocation4], %s639_s18, %s639_s18, %s640_s19  }
  0x38   :  { %s563_s25 = scalar_lea.hbm %s799_s3, 16 }
  0x39   :  { %p564_p10 = scmp.ne.s32.totalorder %s799_s3, %s563_s25  ;;  %p567_p11 = scmp.lt.u32.totalorder %s563_s25, %s799_s3 }
  0x3b   :  { %p569_p12 = pnand %p567_p11, %p564_p10 }
  0x3d   :  { %572 = shalt.err (!%p569_p12)
}
  0x3e   :  { %s573_s2 = scalar_lea.vmem %s52_s13, 16  ;;  %s577_s30 = scalar_lea.vmem %s52_s13, 32 }
  0x3f   :  { %p574_p13 = scmp.ne.s32.totalorder %s52_s13, %s573_s2  ;;  %p578_p0 = scmp.lt.s32.totalorder %s52_s13, %s52_s13 }
  0x40   :  { %p579_p1 = scmp.lt.s32.totalorder %s577_s30, %s573_s2 }
  0x42   :  { %p580_p2 = por %p579_p1, %p578_p0 }
  0x44   :  { %p581_p3 = pnand %p580_p2, %p574_p13 }
  0x46   :  { %584 = shalt.err (!%p581_p3)
}
  0x47   :  { %54 = dma.hbm_to_vmem [thread:$0]  %s799_s3, 16, %s52_s13, [#allocation6]  }
  0x48   :  { %s643_s19 = smov [#allocation10]   ;;  %s644_s11 = smov [#allocation11]  }
  0x49   :  { %s73_s9 = sshll.u32 %s643_s19, 4  ;;  %s83_s12 = sshll.u32 %s644_s11, 4  ;;  %s74_s9 = int_to_ptr.vmem [resolvable:$true] %s73_s9  ;;  %s84_s12 = int_to_ptr.vmem [resolvable:$true] %s83_s12 }
  0x4a   :  { %s585_s7 = scalar_lea.hbm %s801_s5, 16 }
  0x4b   :  { %p586_p4 = scmp.ne.s32.totalorder %s801_s5, %s585_s7  ;;  %p589_p5 = scmp.lt.u32.totalorder %s585_s7, %s801_s5 }
  0x4d   :  { %p591_p6 = pnand %p589_p5, %p586_p4 }
  0x4f   :  { %594 = shalt.err (!%p591_p6)
}
  0x50   :  { %s595_s3 = scalar_lea.vmem %s74_s9, 16  ;;  %s599_s13 = scalar_lea.vmem %s74_s9, 32 }
  0x51   :  { %p596_p7 = scmp.ne.s32.totalorder %s74_s9, %s595_s3  ;;  %p600_p8 = scmp.lt.s32.totalorder %s74_s9, %s74_s9 }
  0x52   :  { %p601_p9 = scmp.lt.s32.totalorder %s599_s13, %s595_s3 }
  0x54   :  { %p602_p10 = por %p601_p9, %p600_p8 }
  0x56   :  { %p603_p11 = pnand %p602_p10, %p596_p7 }
  0x58   :  { %606 = shalt.err (!%p603_p11)
}
  0x59   :  { %76 = dma.hbm_to_vmem [thread:$0]  %s801_s5, 16, %s74_s9, [#allocation9]  }
  0x5a   :  { %s607_s24 = scalar_lea.hbm %s802_s6, 16 }
  0x5b   :  { %p608_p12 = scmp.ne.s32.totalorder %s802_s6, %s607_s24  ;;  %p611_p13 = scmp.lt.u32.totalorder %s607_s24, %s802_s6 }
  0x5d   :  { %p613_p0 = pnand %p611_p13, %p608_p12 }
  0x5f   :  { %616 = shalt.err (!%p613_p0)
}
  0x60   :  { %s617_s29 = scalar_lea.vmem %s84_s12, 16  ;;  %s621_s2 = scalar_lea.vmem %s84_s12, 32 }
  0x61   :  { %p618_p1 = scmp.ne.s32.totalorder %s84_s12, %s617_s29  ;;  %p622_p2 = scmp.lt.s32.totalorder %s84_s12, %s84_s12 }
  0x62   :  { %p623_p3 = scmp.lt.s32.totalorder %s621_s2, %s617_s29 }
  0x64   :  { %p624_p4 = por %p623_p3, %p622_p2 }
  0x66   :  { %p625_p5 = pnand %p624_p4, %p618_p1 }
  0x68   :  { %628 = shalt.err (!%p625_p5)
}
  0x69   :  { %86 = dma.hbm_to_vmem [thread:$0]  %s802_s6, 16, %s84_s12, [#allocation12]  }
  0x6a   :  { %629 = dma.done.wait [#allocation4], 512  }
  0x6b   :  { %630 = vsyncadd [#allocation4], 4294966784 }
  0x6c   :  { %631 = dma.done.wait [#allocation6], 528  }
  0x6d   :  { %632 = vsyncadd [#allocation6], 4294966768 }
  0x6e   :  { %633 = dma.done.wait [#allocation9], 1040  }
  0x6f   :  { %634 = vsyncadd [#allocation9], 4294966256 }
  0x70   :  { %635 = dma.done.wait [#allocation12], 16  }
  0x71   :  { %636 = vsyncadd [#allocation12], 4294967280  ;;  %v645_v1 = vmov 0.0|0.0   ;;  %vm646_vm0 = vmmov 0   ;;  %v647_v2 = vmov 0.0   ;;  %v113_v3 = vld [vmem:[#allocation5] sm:$0xff]  ;;  %v191_v29 = vlaneseq }
  0x72   :  { %462 = vmatprep.subr.bf16.mxu1 %v645_v1  ;;  %429 = vmatprep.mubr.msk.f32.mxu1 %vm646_vm0, %v647_v2  ;;  %v114_v4 = vld [vmem:[#allocation5 + $0x8] sm:$0xff]  ;;  %v115_v5 = vld [vmem:[#allocation5 + $0x10] sm:$0xff]  ;;  %v116_v7 = vld [vmem:[#allocation5 + $0x18] sm:$0xff]  ;;  %vm117_vm1 = vcmask 261120   ;;  %vm291_vm2 = vcmask 523264   ;;  %vm373_vm3 = vcmask 522240  }
  0x73   :  { %474 = vmatprep.subr.bf16.mxu0 %v645_v1  ;;  %459 = vmatprep.mubr.msk.f32.mxu0 %vm646_vm0, %v647_v2  ;;  %v463_v6 = vpack.c.bf16 %v114_v4, %v113_v3  ;;  %v466_v8 = vpack.c.bf16 %v116_v7, %v115_v5  ;;  %v276_v9 = vld [vmem:[#allocation8] sm:$0xff]  ;;  %v277_v10 = vld [vmem:[#allocation8 + $0x8] sm:$0xff]  ;;  %v108_v14 = vld [vmem:[%s796_s0 + $0x7] sm:$0x1]  ;;  %v192_v30 = vshrl.u32 %v191_v29, 7  ;;  %vm385_vm4 = vcmask 6144  }
  0x74   :  { %v109_v11 = vld [vmem:[#allocation3] sm:$0xff]  ;;  %v110_v12 = vld [vmem:[#allocation3 + $0x8] sm:$0xff]  ;;  %v475_v13 = vpack.c.bf16 %v277_v10, %v276_v9  ;;  %v111_v16 = vld [vmem:[#allocation3 + $0x10] sm:$0xff] }
  0x75   :  { %464 = vmatpush3.bf16.msra.mxu1 %v463_v6  ;;  %v469_v15 = vpack.c.bf16 %v110_v12, %v109_v11  ;;  %v112_v17 = vld [vmem:[#allocation3 + $0x18] sm:$0xff]  ;;  %v107_v19 = vld [vmem:[%s796_s0] sm:$0x7f]  ;;  %v280_v23 = vld [vmem:[#allocation8 + $0x20] sm:$0xff]  ;;  %v193_v33 = vsub.s32 0, %v192_v30 }
  0x76   :  { %465 = vmatprep.subr.bf16.mxu1 %v645_v1  ;;  %476 = vmatpush3.bf16.msra.mxu0 %v475_v13  ;;  %v472_v18 = vpack.c.bf16 %v112_v17, %v111_v16  ;;  %v278_v20 = vld [vmem:[#allocation8 + $0x10] sm:$0xff]  ;;  %v279_v21 = vld [vmem:[#allocation8 + $0x18] sm:$0xff]  ;;  %v281_v24 = vld [vmem:[#allocation8 + $0x28] sm:$0xff] }
  0x77   :  { %477 = vmatprep.subr.bf16.mxu0 %v645_v1  ;;  %v478_v22 = vpack.c.bf16 %v279_v21, %v278_v20  ;;  %v481_v25 = vpack.c.bf16 %v281_v24, %v280_v23  ;;  %v282_v26 = vld [vmem:[#allocation8 + $0x30] sm:$0xff]  ;;  %v283_v27 = vld [vmem:[#allocation8 + $0x38] sm:$0xff]  ;;  %v398_v40 = vld [vmem:[#allocation10] ss:$0 sm:$0xff] }
  0x78   :  { %v484_v28 = vpack.c.bf16 %v283_v27, %v282_v26  ;;  %v397_v36 = vld [vmem:[#allocation7] ss:$0 sm:$0xff]  ;;  %v400_v42 = vld [vmem:[#allocation11] ss:$0 sm:$0xff]  ;;  %v401_v47 = vld [vmem:[#allocation2] ss:$0 sm:$0xff] }
  0x79   :  { %467 = vmatpush3.bf16.msra.mxu1 %v466_v8 }
  0x7a   :  { %468 = vmatprep.subr.bf16.mxu1 %v645_v1  ;;  %479 = vmatpush3.bf16.msra.mxu0 %v478_v22 }
  0x7b   :  { %480 = vmatprep.subr.bf16.mxu0 %v645_v1 }
  0x7c   :  { %430 = vmatmul.mubr.msk.f32.vlgmr.msra.gmra.mrb[0].mxu1 %vm117_vm1, %v108_v14 }
  0x7d   :  { %470 = vmatpush3.bf16.msra.mxu1 %v469_v15  ;;  %440 = vmatprep.mubr.msk.f32.mxu1 %vm646_vm0, %v647_v2 }
  0x7e   :  { %471 = vmatprep.subr.bf16.mxu1 %v645_v1  ;;  %482 = vmatpush3.bf16.msra.mxu0 %v481_v25 }
  0x7f   :  { %483 = vmatprep.subr.bf16.mxu0 %v645_v1 }
  0x81   :  { %473 = vmatpush3.bf16.msra.mxu1 %v472_v18 }
  0x82   :  { %485 = vmatpush3.bf16.msra.mxu0 %v484_v28 }
  0x84   :  { %441 = vmatmul.mubr.msk.f32.vlgmr.msra.gmra.mrb[2].mxu1 %vm117_vm1, %v107_v19 }
 0x14f   :  { %v187_v31 = vpop.f32.mrb[0].mxu1 }
 0x150   :  { %v431_v32 = vpop.f32.mrb[1].mxu1  ;;  %v194_v34 = vrot.slane %v187_v31, %v193_v33 }
 0x157   :  { %v264_v35 = vpop.f32.mrb[2].mxu1 }
 0x158   :  { %v265_v37 = vadd.f32 %v264_v35, %v194_v34  ;;  %v442_v38 = vpop.f32.mrb[3].mxu1 }
 0x15a   :  { %v275_v39 = vadd.f32 %v397_v36, %v265_v37 }
 0x15c   :  { %460 = vmatmul.mubr.msk.f32.vlgmr.msra.gmra.mrb[0].mxu0 %vm291_vm2, %v275_v39 }
 0x22f   :  { %v361_v41 = vpop.f32.mrb[0].mxu0 }
 0x230   :  { %v362_v43 = vadd.f32 %v398_v40, %v361_v41  ;;  %v461_v44 = vpop.f32.mrb[1].mxu0 }
 0x232   :  { %v372_v45 = vmul.f32 %v400_v42, %v362_v43 }
 0x234   :  { %v374_v46 = vsel %vm373_vm3, %v372_v45, 0.0 }
 0x235   :  { %375 = vadd.xlane.f32.xlu0 %v374_v46 }
 0x2c2   :  { %v376_v48 = vpop.xlane.xlu0 %375 }
 0x2c3   :  { %v384_v49 = vadd.f32 %v401_v47, %v376_v48 }
 0x2c5   :  { %386 = vst.msk [vmem:[%s804_s8] sm:$0x7f] %vm385_vm4, %v384_v49 }
 0x2c6   :  { %391 = vsyncpa [#allocation4], 1 }
 0x2c7   :  { %392 = vsyncpa [#allocation6], 1 }
 0x2c8   :  { %393 = vsyncpa [#allocation9], 1 }
 0x2c9   :  { %394 = vsyncpa [#allocation12], 1 }

// kernel: _forward_impl.3
= control target key start
LH: loop header
LB: loop body
LE: loop exit
PB: predicated region body
PF: predicated region fallthrough
CT: control target
= control target key end

     0   :  { %v793_v3 = vmov 0.0   ;;  %vm40_vm0 = vcmask 261120   ;;  %vm794_vm1 = vmmov 0   ;;  %vm27_vm2 = vcmask 64512   ;;  %s797_s11 = smov 96   ;;  %s798_s12 = smov 32   ;;  %s1013_s2 = inlined_call_operand.vmem [shape: f32[2,32,224], index: 2, kind: input, shape index: {}]   ;;  %s1014_s1 = inlined_call_operand.vmem [shape: f32[8,32], index: 1, kind: input, shape index: {}]   ;;  %s1015_s6 = inlined_call_operand.vmem [shape: f32[2,1,96], index: 6, kind: input, shape index: {}]   ;;  %s1016_s0 = inlined_call_operand.vmem [shape: f32[8,8], index: 0, kind: input, shape index: {}]   ;;  %s1017_s4 = inlined_call_operand.vmem [shape: f32[2,64,96], index: 4, kind: input, shape index: {}]   ;;  %s1018_s3 = inlined_call_operand.vmem [shape: f32[2,1,64], index: 3, kind: input, shape index: {}]   ;;  %s1019_s5 = inlined_call_operand.vmem [shape: f32[2,1,96], index: 5, kind: input, shape index: {}]   ;;  %s1020_s7 = inlined_call_operand.vmem [shape: f32[8,32], index: 7, kind: output, shape index: {}]  }
   0x1   :  { %v33_v0 = vld [vmem:[%s1013_s2 + $0x8] sm:$0xff]  ;;  %v35_v1 = vld [vmem:[%s1013_s2 + $0x18] sm:$0xff]  ;;  %v32_v2 = vld [vmem:[%s1013_s2] sm:$0xff]  ;;  %108 = vmatprep.mubr.f32.mxu0 %v793_v3  ;;  %708 = vmatprep.mubr.msk.f32.mxu1 %vm794_vm1, %v793_v3  ;;  %v796_v20 = vmov 0.0|0.0   ;;  %vm225_vm3 = vcmask 523264  }
   0x2   :  { %v735_v4 = vpack.c.bf16 %v35_v1, %v33_v0  ;;  %v34_v5 = vld [vmem:[%s1013_s2 + $0x10] sm:$0xff]  ;;  %v37_v6 = vld [vmem:[%s1013_s2 + $0x28] sm:$0xff]  ;;  %v39_v7 = vld [vmem:[%s1013_s2 + $0x38] sm:$0xff]  ;;  %743 = vmatprep.subr.bf16.mxu1 %v796_v20 }
   0x3   :  { %v737_v8 = vpack.c.bf16 %v34_v5, %v32_v2  ;;  %v739_v9 = vpack.c.bf16 %v39_v7, %v37_v6  ;;  %v36_v10 = vld [vmem:[%s1013_s2 + $0x20] sm:$0xff]  ;;  %v38_v11 = vld [vmem:[%s1013_s2 + $0x30] sm:$0xff]  ;;  %v211_v22 = vld [vmem:[%s1017_s4 + $0x8] sm:$0xff] }
   0x4   :  { %736 = vmatprep.subr.bf16.mxu0 %v735_v4  ;;  %v741_v12 = vpack.c.bf16 %v38_v11, %v36_v10  ;;  %v867_v13 = vld [vmem:[%s1014_s1] sm:$0xff]  ;;  %s795_s1 = smov 64   ;;  %v212_v23 = vld [vmem:[%s1017_s4 + $0x10] sm:$0xff]  ;;  %v213_v25 = vld [vmem:[%s1017_s4 + $0x18] sm:$0xff] }
   0x5   :  { %738 = vmatpush1.bf16.msra.mxu0 %v737_v8  ;;  %v633_v14 = vld [vmem:[%s1015_s6] ss:$0 sm:$0xff]  ;;  %v747_v26 = vpack.c.bf16 %v213_v25, %v212_v23  ;;  %v215_v28 = vld [vmem:[%s1017_s4 + $0x28] sm:$0xff]  ;;  %v216_v31 = vld [vmem:[%s1017_s4 + $0x30] sm:$0xff] }
   0x6   :  { %740 = vmatprep.subr.bf16.mxu0 %v739_v9  ;;  %v884_v18 = vld [vmem:[%s1016_s0] sm:$0xff]  ;;  %v217_v32 = vld [vmem:[%s1017_s4 + $0x38] sm:$0xff]  ;;  %v640_v54 = vld [vmem:[%s1013_s2 + $0x48] sm:$0xff] }
   0x7   :  { %v28_v19 = vsel %vm27_vm2, %v884_v18, 0.0  ;;  %v210_v21 = vld [vmem:[%s1017_s4] sm:$0xff]  ;;  %v753_v33 = vpack.c.bf16 %v217_v32, %v216_v31  ;;  %v642_v55 = vld [vmem:[%s1013_s2 + $0x58] sm:$0xff]  ;;  %v641_v58 = vld [vmem:[%s1013_s2 + $0x50] sm:$0xff] }
   0x8   :  { %v744_v24 = vpack.c.bf16 %v211_v22, %v210_v21  ;;  %v214_v27 = vld [vmem:[%s1017_s4 + $0x20] sm:$0xff]  ;;  %v755_v57 = vpack.c.bf16 %v642_v55, %v640_v54  ;;  %v644_v59 = vld [vmem:[%s1013_s2 + $0x68] sm:$0xff]  ;;  %v646_v60 = vld [vmem:[%s1013_s2 + $0x78] sm:$0xff] }
   0x9   :  { %742 = vmatpush1.bf16.msra.mxu0 %v741_v12  ;;  %v750_v29 = vpack.c.bf16 %v215_v28, %v214_v27  ;;  %v635_v34 = vld [vmem:[%s1018_s3] ss:$0 sm:$0xff]  ;;  %v759_v62 = vpack.c.bf16 %v646_v60, %v644_v59  ;;  %v645_v0 = vld [vmem:[%s1013_s2 + $0x70] sm:$0xff]  ;;  %v654_v12 = vld [vmem:[%s1017_s4 + $0x48] sm:$0xff] }
   0xa   :  { %687 = vmatprep.subr.mxu0 %v793_v3  ;;  %745 = vmatpush3.bf16.msra.mxu1 %v744_v24  ;;  %v636_v41 = vld [vmem:[%s1019_s5] ss:$0 sm:$0xff]  ;;  %v649_v21 = vld [vmem:[%s1015_s6 + $0x1] ss:$0 sm:$0xff]  ;;  %v660_v27 = vld [vmem:[%s1017_s4 + $0x78] sm:$0xff] }
   0xb   :  { %746 = vmatprep.subr.bf16.mxu1 %v796_v20  ;;  %v639_v56 = vld [vmem:[%s1013_s2 + $0x40] sm:$0xff] }
   0xc   :  { %632 = vmatmul.mubr.msk.f32.vlgmr.msra.gmra.mrb[0].mxu0 %vm40_vm0, %v867_v13  ;;  %v757_v61 = vpack.c.bf16 %v641_v58, %v639_v56  ;;  %v643_v63 = vld [vmem:[%s1013_s2 + $0x60] sm:$0xff] }
   0xd   :  { %689 = vmatprep.mubr.msk.f32.mxu0 %vm794_vm1, %v793_v3  ;;  %v761_v2 = vpack.c.bf16 %v645_v0, %v643_v63  ;;  %v653_v11 = vld [vmem:[%s1017_s4 + $0x40] sm:$0xff] }
   0xe   :  { %748 = vmatpush3.bf16.msra.mxu1 %v747_v26  ;;  %v659_v26 = vld [vmem:[%s1017_s4 + $0x70] sm:$0xff] }
   0xf   :  { %749 = vmatprep.subr.bf16.mxu1 %v796_v20  ;;  %v773_v28 = vpack.c.bf16 %v660_v27, %v659_v26 }
  0x12   :  { %751 = vmatpush3.bf16.msra.mxu1 %v750_v29 }
  0x13   :  { %752 = vmatprep.subr.bf16.mxu1 %v796_v20 }
  0x16   :  { %754 = vmatpush3.bf16.msra.mxu1 %v753_v33  ;;  %v662_v33 = vld [vmem:[%s1019_s5 + $0x1] ss:$0 sm:$0xff] }
  0x17   :  { %763 = vmatprep.subr.bf16.mxu1 %v796_v20 }
  0xdf   :  { %v110_v15 = vpop.f32.mrb[0].mxu0 }
  0xe0   :  { %124 = vrot.lane.b32.xlu0 %v110_v15, %s795_s1  ;;  %v112_v16 = vpop.f32.mrb[1].mxu0  ;;  %v207_v36 = vadd.f32 %v635_v34, %v110_v15  ;;  %v656_v15 = vld [vmem:[%s1017_s4 + $0x58] sm:$0xff] }
  0xe1   :  { %v122_v17 = vadd.f32 %v633_v14, %v112_v16  ;;  %v764_v14 = vpack.c.bf16 %v654_v12, %v653_v11 }
  0xe3   :  { %307 = vrot.lane.b32.xlu1 %v122_v17, %s795_s1 }
  0xff   :  { %29 = vadd.xlane.f32.xlu0 %v28_v19 }
 0x152   :  { %v125_v30 = vpop.permute.xlu0 %124 }
 0x153   :  { %688 = vmatpush3.msra.mxu0 %v125_v30 }
 0x154   :  { %690 = vmatmul.mubr.msk.f32.vlgmr.msra.gmra.mrb[2].mxu0 %vm27_vm2, %v884_v18  ;;  %756 = vmatprep.subr.bf16.mxu0 %v755_v57 }
 0x155   :  { %406 = vmatprep.mubr.f32.mxu0 %v793_v3  ;;  %v308_v50 = vpop.permute.xlu1 %307  ;;  %758 = vmatpush1.bf16.msra.mxu0 %v757_v61 }
 0x156   :  { %760 = vmatprep.subr.bf16.mxu0 %v759_v62 }
 0x159   :  { %762 = vmatpush1.bf16.msra.mxu0 %v761_v2 }
 0x15a   :  { %711 = vmatprep.subr.mxu0 %v793_v3 }
 0x18c   :  { %v923_v35 = vpop.xlane.xlu0 %29 }
 0x18d   :  { %v208_v37 = vmul.f32 %v207_v36, %v923_v35 }
 0x227   :  { %v196_v38 = vpop.f32.mrb[2].mxu0 }
 0x228   :  { %v209_v39 = vadd.f32 %v208_v37, %v196_v38  ;;  %v691_v40 = vpop.f32.mrb[3].mxu0 }
 0x22a   :  { %709 = vmatmul.mubr.msk.f32.vlgmr.msra.gmra.mrb[0].mxu1 %vm225_vm3, %v209_v39 }
 0x22b   :  { %732 = vmatprep.mubr.msk.f32.mxu1 %vm794_vm1, %v793_v3  ;;  %765 = vmatpush3.bf16.msra.mxu1 %v764_v14 }
 0x22c   :  { %766 = vmatprep.subr.bf16.mxu1 %v796_v20 }
 0x2fd   :  { %v295_v42 = vpop.f32.mrb[0].mxu1 }
 0x2fe   :  { %v296_v43 = vadd.f32 %v636_v41, %v295_v42  ;;  %v710_v44 = vpop.f32.mrb[1].mxu1 }
 0x300   :  { %v299_v45 = vadd.f32 %v296_v43, %v122_v17  ;;  %v658_v17 = vld [vmem:[%s1017_s4 + $0x68] sm:$0xff] }
 0x302   :  { %v638_v46 = vmul.f32 -1.442695, %v299_v45 }
 0x304   :  { %781 = vpow2.f32 %v638_v46 }
 0x30e   :  { %v782_v47 = vpop.eup %781 }
 0x30f   :  { %v303_v48 = vadd.f32 1.0, %v782_v47 }
 0x311   :  { %783 = vrcp.f32 %v303_v48 }
 0x31b   :  { %v784_v49 = vpop.eup %783 }
 0x31c   :  { %v310_v51 = vmul.f32 %v784_v49, %v308_v50  ;;  %v317_v5 = vsub.f32 1.0, %v784_v49 }
 0x31e   :  { %312 = vrot.lane.b32.xlu1 %v310_v51, %s795_s1 }
 0x390   :  { %v313_v52 = vpop.permute.xlu1 %312 }
 0x391   :  { %v315_v53 = vadd.f32 %v313_v52, %v296_v43 }
 0x393   :  { %785 = vtanh.f32 %v315_v53 }
 0x39d   :  { %v786_v1 = vpop.eup %785 }
 0x39e   :  { %319 = vrot.lane.b32.xlu1 %v786_v1, %s797_s11 }
 0x3a2   :  { %323 = vrot.lane.b32.xlu1 %v867_v13, %s798_s12  ;;  %v655_v13 = vld [vmem:[%s1017_s4 + $0x50] sm:$0xff] }
 0x3a3   :  { %v767_v16 = vpack.c.bf16 %v656_v15, %v655_v13 }
 0x3a5   :  { %768 = vmatpush3.bf16.msra.mxu1 %v767_v16 }
 0x3a6   :  { %769 = vmatprep.subr.bf16.mxu1 %v796_v20 }
 0x410   :  { %v320_v4 = vpop.permute.xlu1 %319 }
 0x411   :  { %v322_v7 = vmul.f32 %v320_v4, %v317_v5 }
 0x414   :  { %v324_v6 = vpop.permute.xlu1 %323 }
 0x415   :  { %v326_v8 = vmul.f32 %v784_v49, %v324_v6 }
 0x417   :  { %v327_v9 = vadd.f32 %v326_v8, %v322_v7 }
 0x419   :  { %338 = vrot.lane.b32.xlu1 %v327_v9, %s797_s11 }
 0x48b   :  { %v339_v10 = vpop.permute.xlu1 %338 }
 0x48c   :  { %647 = vmatmul.mubr.msk.f32.vlgmr.msra.gmra.mrb[4].mxu0 %vm40_vm0, %v339_v10 }
 0x48d   :  { %713 = vmatprep.mubr.msk.f32.mxu0 %vm794_vm1, %v793_v3  ;;  %v657_v3 = vld [vmem:[%s1017_s4 + $0x60] sm:$0xff] }
 0x48e   :  { %v770_v19 = vpack.c.bf16 %v658_v17, %v657_v3 }
 0x490   :  { %771 = vmatpush3.bf16.msra.mxu1 %v770_v19 }
 0x491   :  { %772 = vmatprep.subr.bf16.mxu1 %v796_v20  ;;  %v652_v20 = vld [vmem:[%s1018_s3 + $0x1] ss:$0 sm:$0xff] }
 0x494   :  { %774 = vmatpush3.bf16.msra.mxu1 %v773_v28 }
 0x55f   :  { %v408_v22 = vpop.f32.mrb[4].mxu0 }
 0x560   :  { %423 = vrot.lane.b32.xlu1 %v408_v22, %s795_s1  ;;  %v410_v23 = vpop.f32.mrb[5].mxu0  ;;  %v504_v29 = vadd.f32 %v652_v20, %v408_v22 }
 0x561   :  { %v421_v24 = vadd.f32 %v649_v21, %v410_v23 }
 0x562   :  { %v505_v30 = vmul.f32 %v504_v29, %v923_v35 }
 0x564   :  { %605 = vrot.lane.b32.xlu1 %v421_v24, %s795_s1 }
 0x5d2   :  { %v424_v25 = vpop.permute.xlu1 %423 }
 0x5d3   :  { %712 = vmatpush3.msra.mxu0 %v424_v25 }
 0x5d4   :  { %714 = vmatmul.mubr.msk.f32.vlgmr.msra.gmra.mrb[6].mxu0 %vm27_vm2, %v884_v18 }
 0x5d6   :  { %v606_v35 = vpop.permute.xlu1 %605 }
 0x6a7   :  { %v492_v31 = vpop.f32.mrb[6].mxu0 }
 0x6a8   :  { %v506_v32 = vadd.f32 %v505_v30, %v492_v31  ;;  %v715_v18 = vpop.f32.mrb[7].mxu0 }
 0x6aa   :  { %733 = vmatmul.mubr.msk.f32.vlgmr.msra.gmra.mrb[2].mxu1 %vm225_vm3, %v506_v32 }
 0x77d   :  { %v593_v34 = vpop.f32.mrb[2].mxu1 }
 0x77e   :  { %v594_v36 = vadd.f32 %v662_v33, %v593_v34  ;;  %v734_v37 = vpop.f32.mrb[3].mxu1 }
 0x780   :  { %v597_v38 = vadd.f32 %v594_v36, %v421_v24 }
 0x782   :  { %v664_v39 = vmul.f32 -1.442695, %v597_v38 }
 0x784   :  { %787 = vpow2.f32 %v664_v39 }
 0x78e   :  { %v788_v40 = vpop.eup %787 }
 0x78f   :  { %v601_v41 = vadd.f32 1.0, %v788_v40 }
 0x791   :  { %789 = vrcp.f32 %v601_v41 }
 0x79b   :  { %v790_v42 = vpop.eup %789 }
 0x79c   :  { %v608_v43 = vmul.f32 %v790_v42, %v606_v35  ;;  %v615_v47 = vsub.f32 1.0, %v790_v42  ;;  %v621_v49 = vmul.f32 %v790_v42, %v327_v9 }
 0x79e   :  { %610 = vrot.lane.b32.xlu1 %v608_v43, %s795_s1 }
 0x810   :  { %v611_v44 = vpop.permute.xlu1 %610 }
 0x811   :  { %v613_v45 = vadd.f32 %v611_v44, %v594_v36 }
 0x813   :  { %791 = vtanh.f32 %v613_v45 }
 0x81d   :  { %v792_v46 = vpop.eup %791 }
 0x81e   :  { %617 = vrot.lane.b32.xlu1 %v792_v46, %s797_s11 }
 0x890   :  { %v618_v48 = vpop.permute.xlu1 %617 }
 0x891   :  { %v620_v50 = vmul.f32 %v618_v48, %v615_v47 }
 0x893   :  { %v622_v51 = vadd.f32 %v621_v49, %v620_v50 }
 0x895   :  { %624 = vrot.lane.b32.xlu0 %v622_v51, %s797_s11 }
 0x907   :  { %v625_v52 = vpop.permute.xlu0 %624 }
 0x908   :  { %627 = vst.msk [vmem:[%s1020_s7] sm:$0xff] %vm40_vm0, %v625_v52 }

</bundles_post_ra>
